<compile_context>
chip_gen: v6e
topology: v6e:2x2x1
jax: 0.10.0
libtpu: 0.0.40
codegen_flags: <defaults>
</compile_context>

<pallas_src>
import functools

import jax
import jax.numpy as jnp
from jax import lax
from jax.experimental import pallas as pl
from jax.experimental.pallas import tpu as pltpu


_TN_DIMS = (((0,), (0,)), ((), ()))   # contract dim 0 of both operands: col^T @ W^T


@functools.lru_cache(maxsize=None)
def _roll_like_numpy() -> bool:
    """Probe pltpu.roll's rotation convention once on the running backend.

    Returns True if pltpu.roll(x, s)[i] == x[(i - s) mod N] (np.roll semantics).
    """
    def probe(x_ref, o_ref):
        o_ref[...] = pltpu.roll(x_ref[...], 1, 1)

    x = lax.broadcasted_iota(jnp.float32, (8, 128), 1)
    out = pl.pallas_call(
        probe, out_shape=jax.ShapeDtypeStruct((8, 128), jnp.float32))(x)
    return bool(out[0, 0] == 127.0)


@functools.lru_cache(maxsize=None)
def _fast_path_supported(K: int, L: int, C: int) -> bool:
    """Probe the optimized path (bf16 roll/where + transposed-LHS matmul + f32
    transpose) at the real shapes; fall back to the legacy orientation if any of
    it fails to lower on this backend."""
    def probe(a_ref, w_ref, o_ref):
        a = a_ref[...].astype(jnp.bfloat16)                                # (K, L)
        mask = lax.broadcasted_iota(jnp.int32, (1, L), 1) >= 1
        a = jnp.where(mask, pltpu.roll(a, 1, 1), jnp.zeros((), jnp.bfloat16))
        acc = lax.dot_general(a, w_ref[...], dimension_numbers=_TN_DIMS,
                              preferred_element_type=jnp.float32)          # (L, C)
        o_ref[...] = jnp.transpose(acc)                                    # (C, L)

    try:
        a = jnp.zeros((K, L), jnp.float32)
        w = jnp.zeros((K, C), jnp.bfloat16)
        jax.block_until_ready(
            pl.pallas_call(probe,
                           out_shape=jax.ShapeDtypeStruct((C, L), jnp.float32))(a, w))
        return True
    except Exception:
        return False


def _cca_kernel(x_ref, w1_ref, b1_ref, w2_ref, b2_ref,
                wd1_ref, bd1_ref, wd2_ref, bd2_ref,
                o_ref, col_ref, *, H, W, C, B, roll_like_numpy, fast_path):
    HW = H * W
    L = B * HW
    inv_hw = 1.0 / float(HW)

    # ---- hoisted per-lane border masks, shared by both convs and all images ----
    pos = lax.broadcasted_iota(jnp.int32, (1, L), 1)
    row = (pos % HW) // W
    col = pos % W
    masks = []
    for k in range(9):
        dy, dx = k // 3 - 1, k % 3 - 1
        m = None
        if dy == -1:
            m = row >= 1
        elif dy == 1:
            m = row < H - 1
        if dx == -1:
            v = col >= 1
            m = v if m is None else (m & v)
        elif dx == 1:
            v = col < W - 1
            m = v if m is None else (m & v)
        masks.append(m)

    def build_im2col(img):
        """img: (C, L), images concatenated on lanes.  Writes col_ref (9C, L) bf16.

        Each tap is a lane rotation (XLU); the masks zero every destination whose
        source pixel lies outside its own image, which also kills cross-image and
        cross-array wrap of the roll, so zero-padded 'same' conv semantics hold.
        """
        zero = jnp.zeros((), img.dtype)
        for k in range(9):
            dy, dx = k // 3 - 1, k % 3 - 1
            off = dy * W + dx                           # dest p reads source p + off
            if off == 0:
                tap = img
            else:
                shift = ((-off) if roll_like_numpy else off) % L
                tap = pltpu.roll(img, shift, 1)
            if masks[k] is not None:
                tap = jnp.where(masks[k], tap, zero)
            # sublane-aligned store (C % 16 == 0 keeps bf16 packing aligned)
            col_ref[k * C:(k + 1) * C, :] = tap.astype(jnp.bfloat16)

    def conv(w_ref, b_ref):
        """3x3 conv of whatever is in col_ref; returns (C, L) f32 pre-activation."""
        if fast_path:
            # Weight-stationary RHS (9C, C); L spatial rows stream through the MXU.
            acc = lax.dot_general(col_ref[...], w_ref[...],
                                  dimension_numbers=_TN_DIMS,
                                  preferred_element_type=jnp.float32)      # (L, C)
            acc = acc + b_ref[...]                                         # (1, C)
            return jnp.transpose(acc)                                      # (C, L)
        # Legacy orientation (known-good lowering path).
        acc = jnp.dot(w_ref[...], col_ref[...],
                      preferred_element_type=jnp.float32)                  # (C, L)
        return acc + b_ref[...]                                            # (C, 1)

    # ---- conv1 (im2col matmul, bf16 in / f32 acc) + LeakyReLU(0.2) ----
    build_im2col(x_ref[0].astype(jnp.bfloat16) if fast_path else x_ref[0])
    o1 = conv(w1_ref, b1_ref)
    o1 = jnp.where(o1 >= 0, o1, 0.2 * o1)

    # ---- conv2 ----
    build_im2col(o1.astype(jnp.bfloat16) if fast_path else o1)
    o2 = conv(w2_ref, b2_ref)                                              # (C, L)

    # ---- per-image channel attention (off-MXU) + residual ----
    for b in range(B):
        ob = o2[:, b * HW:(b + 1) * HW]                                    # (C, HW)
        mean = jnp.sum(ob, axis=1, keepdims=True) * inv_hw                 # (C, 1)
        d = ob - mean
        var = jnp.sum(d * d, axis=1, keepdims=True) * inv_hw
        s = jnp.sqrt(var) + mean                                           # (C, 1)

        # conv_du: (4,C)@s and (C,4)@h as VPU multiplies + sublane/lane reduces.
        h = jnp.maximum(jnp.sum(wd1_ref[...] * s, axis=0, keepdims=True)
                        + bd1_ref[...], 0.0)                               # (1, 4)
        a = jnp.tanh(jnp.sum(wd2_ref[...] * h, axis=1, keepdims=True)
                     + bd2_ref[...])                                       # (C, 1)

        o_ref[0, :, b * HW:(b + 1) * HW] = (
            x_ref[0, :, b * HW:(b + 1) * HW] + a * s)                      # lane-dense


def cca_layer(x_nchw, params, images_per_step=None):
    """x_nchw: (N, C, H, W) float32 (PyTorch layout). Returns (N, C, H, W) float32."""
    N, C, H, W = x_nchw.shape
    HW = H * W
    assert C % 16 == 0, "need C % 16 == 0 (bf16 sublane packing of im2col stores)"
    assert HW % 128 == 0, "need H*W % 128 == 0 (lane tiling)"
    assert H >= 2 and W >= 2

    # Fold several images into one grid step (amortizes per-step overhead and MXU
    # weight loads) while keeping >= 2 grid steps when possible for v7x's 2 cores.
    if images_per_step is None:
        images_per_step = max(1, N // 2)
    images_per_step = min(max(1, images_per_step), N)
    while N % images_per_step:
        images_per_step -= 1
    B = images_per_step
    G = N // B
    L = B * HW

    roll_np = _roll_like_numpy()
    fast = _fast_path_supported(9 * C, L, C)

    # Regroup: (N, C, H, W) -> (G, C, B*HW) with a group's images side by side on
    # the lane axis (pure layout plumbing, done by XLA outside the kernel).
    xg = x_nchw.reshape(G, B, C, HW).transpose(0, 2, 1, 3).reshape(G, C, L)

    # 3x3 conv weights, HWIO (3,3,Cin,Cout):
    #   fast   : (9*Cin, Cout)  row = (ky*3+kx)*C + cin   (stationary MXU RHS)
    #   legacy : (Cout, 9*Cin)
    def w3x3(w):
        wt = w.reshape(9 * C, C)
        return (wt if fast else jnp.transpose(wt)).astype(jnp.bfloat16)

    def bias3x3(b):
        return (b.reshape(1, C) if fast else b.reshape(C, 1)).astype(jnp.float32)

    w1f, w2f = w3x3(params["w1"]), w3x3(params["w2"])
    b1 = bias3x3(params["b1"])
    b2 = bias3x3(params["b2"])
    wd1 = params["wd1"].astype(jnp.float32)                       # (C, 4)
    bd1 = params["bd1"].reshape(1, 4).astype(jnp.float32)
    wd2 = jnp.transpose(params["wd2"]).astype(jnp.float32)        # (C, 4)
    bd2 = params["bd2"].reshape(C, 1).astype(jnp.float32)

    kernel = functools.partial(_cca_kernel, H=H, W=W, C=C, B=B,
                               roll_like_numpy=roll_np, fast_path=fast)

    def full(shape):
        return pl.BlockSpec(shape, lambda g: (0,) * len(shape))

    grid_spec = pltpu.PrefetchScalarGridSpec(
        num_scalar_prefetch=0,
        grid=(G,),
        in_specs=[
            pl.BlockSpec((1, C, L), lambda g: (g, 0, 0)),        # x: one group / step
            full(w1f.shape), full(b1.shape),                     # conv1
            full(w2f.shape), full(b2.shape),                     # conv2
            full(wd1.shape), full(bd1.shape),                    # conv_du[0]
            full(wd2.shape), full(bd2.shape),                    # conv_du[2]
        ],
        out_specs=pl.BlockSpec((1, C, L), lambda g: (g, 0, 0)),
        scratch_shapes=[pltpu.VMEM((9 * C, L), jnp.bfloat16)],   # im2col buffer
    )
    out = pl.pallas_call(
        kernel,
        out_shape=jax.ShapeDtypeStruct((G, C, L), jnp.float32),
        grid_spec=grid_spec,
        compiler_params=pltpu.CompilerParams(dimension_semantics=("parallel",)),
    )(xg, w1f, b1, w2f, b2, wd1, bd1, wd2, bd2)

    return out.reshape(G, C, B, HW).transpose(0, 2, 1, 3).reshape(N, C, H, W)


def init_params(key, nf):
    # Synthetic kaiming-style init (HWIO for 3x3 convs, (Cin, Cout) for 1x1 convs).
    # NOTE: the PyTorch module additionally scales conv1 / conv_du by 0.1 at init;
    # full scale is kept here so every branch contributes and the check is strong.
    k1, k2, k3, k4, k5 = jax.random.split(key, 5)
    std3x3 = (2.0 / (nf * 9)) ** 0.5
    w1 = jax.random.normal(k1, (3, 3, nf, nf), jnp.float32) * std3x3
    w2 = jax.random.normal(k2, (3, 3, nf, nf), jnp.float32) * std3x3
    b2 = jax.random.normal(k3, (nf,), jnp.float32) * 0.01
    wd1 = jax.random.normal(k4, (nf, 4), jnp.float32) * (2.0 / nf) ** 0.5
    wd2 = jax.random.normal(k5, (4, nf), jnp.float32) * (2.0 / 4.0) ** 0.5
    return dict(w1=w1, b1=jnp.zeros((nf,), jnp.float32),
                w2=w2, b2=b2,
                wd1=wd1, bd1=jnp.zeros((4,), jnp.float32),
                wd2=wd2, bd2=jnp.zeros((nf,), jnp.float32))


def ref_forward(x, p):
    # Pure-JAX NCHW reference of the PyTorch forward; conv inputs cast to bf16 with
    # f32 accumulation to mirror the kernel's MXU precision.
    def conv3x3(inp, w, b):
        y = lax.conv_general_dilated(
            inp.astype(jnp.bfloat16), w.astype(jnp.bfloat16),
            window_strides=(1, 1), padding="SAME",
            dimension_numbers=("NCHW", "HWIO", "NCHW"),
            preferred_element_type=jnp.float32)
        return y + b.reshape(1, -1, 1, 1)

    o = conv3x3(x, p["w1"], p["b1"])
    o = jnp.where(o >= 0, o, 0.2 * o)
    o = conv3x3(o, p["w2"], p["b2"])
    mean = jnp.mean(o, axis=(2, 3), keepdims=True)
    var = jnp.mean((o - mean) ** 2, axis=(2, 3), keepdims=True)
    s = jnp.sqrt(var) + mean                                            # (N, C, 1, 1)
    h = jnp.maximum(jnp.einsum("nchw,cd->ndhw", s, p["wd1"])
                    + p["bd1"].reshape(1, 4, 1, 1), 0.0)
    a = jnp.tanh(jnp.einsum("ndhw,dc->nchw", h, p["wd2"])
                 + p["bd2"].reshape(1, -1, 1, 1))
    return x + a * s


if __name__ == "__main__":
    N, nf, H, W = 4, 32, 16, 16
    key = jax.random.PRNGKey(0)
    kx, kp = jax.random.split(key)

    x = jax.random.normal(kx, (N, nf, H, W), jnp.float32)   # PyTorch NCHW layout
    params = init_params(kp, nf)

    out = jax.block_until_ready(cca_layer(x, params))       # grid=(2,), 2 images/step
    ref = jax.block_until_ready(ref_forward(x, params))

    assert out.shape == (N, nf, H, W)
    err = float(jnp.max(jnp.abs(out - ref)))
    assert err < 2e-3, f"max abs error {err}"
    print("KERNEL_OK")
</pallas_src>

<mosaic_0001>
module attributes {stable_mosaic.version = 11 : i64} {
  func.func @probe(%arg0: memref<8x128xf32, #tpu.memory_space<vmem>>, %arg1: memref<8x128xf32, #tpu.memory_space<vmem>>) attributes {dimension_semantics = [], scalar_prefetch = 0 : i64, scratch_operands = 0 : i64, tpu.core_type = #tpu.core_type<tc>} {
    %c0 = arith.constant 0 : index
    %c0_0 = arith.constant 0 : index
    %0 = vector.load %arg0[%c0, %c0_0] : memref<8x128xf32, #tpu.memory_space<vmem>>, vector<8x128xf32>
    %c1_i32 = arith.constant 1 : i32
    %1 = tpu.dynamic_rotate %0 by %c1_i32 dim 1 : vector<8x128xf32>, i32 -> vector<8x128xf32>
    %c0_1 = arith.constant 0 : index
    %c0_2 = arith.constant 0 : index
    %2 = vector.load %arg1[%c0_1, %c0_2] : memref<8x128xf32, #tpu.memory_space<vmem>>, vector<8x128xf32>
    tpu.vector_store %arg1[%c0_1, %c0_2], %1 {strides = array<i32>} : memref<8x128xf32, #tpu.memory_space<vmem>>, vector<8x128xf32>,
    return
  }
}

</mosaic_0001>

<bundles_post_ra>
// kernel: tpu_custom_call.1
= control target key start
LH: loop header
LB: loop body
LE: loop exit
PB: predicated region body
PF: predicated region fallthrough
CT: control target
= control target key end

     0   :  { %6 = vsyncpa [#allocation3], 0  ;;  %s106_s0 = inlined_call_operand.hbm [shape: f32[8,128], index: 0, kind: input, shape index: {}]   ;;  %s107_s1 = inlined_call_operand.hbm [shape: f32[8,128], index: 1, kind: output, shape index: {}]  }
   0x1   :  { %7 = vsyncpa [#allocation4], 0  ;;  %s87_s6 = smov [#allocation2]  }
   0x2   :  { %s14_s7 = sshll.u32 %s87_s6, 4  ;;  %s15_s7 = int_to_ptr.vmem [resolvable:$true] %s14_s7 }
   0x3   :  { %s51_s8 = scalar_lea.vmem %s15_s7, 128  ;;  %p56_p1 = scmp.lt.s32.totalorder %s15_s7, %s15_s7 }
   0x4   :  { %p52_p0 = scmp.ne.s32.totalorder %s15_s7, %s51_s8  ;;  %p57_p2 = scmp.lt.s32.totalorder %s51_s8, %s51_s8 }
   0x6   :  { %p58_p3 = por %p57_p2, %p56_p1 }
   0x8   :  { %p59_p4 = pnand %p58_p3, %p52_p0 }
   0xa   :  { %62 = shalt.err (!%p59_p4)
}
   0xb   :  { %17 = dma.hbm_to_vmem [thread:$0]  %s106_s0, 128, %s15_s7, [#allocation3]  }
   0xc   :  { %83 = dma.done.wait [#allocation3], 128  }
   0xd   :  { %84 = vsyncadd [#allocation3], 4294967168  ;;  %v21_v0 = vld [vmem:[#allocation2] sm:$0xff]  ;;  %s88_s11 = smov 1   ;;  %s89_s12 = smov [#allocation5]  }
   0xe   :  { %22 = vrot.lane.b32.xlu0 %v21_v0, %s88_s11  ;;  %s31_s13 = sshll.u32 %s89_s12, 4  ;;  %s32_s13 = int_to_ptr.vmem [resolvable:$true] %s31_s13 }
   0xf   :  { %s63_s14 = scalar_lea.vmem %s32_s13, 128  ;;  %p68_p6 = scmp.lt.s32.totalorder %s32_s13, %s32_s13 }
  0x10   :  { %p64_p5 = scmp.ne.s32.totalorder %s32_s13, %s63_s14  ;;  %p69_p7 = scmp.lt.s32.totalorder %s63_s14, %s63_s14 }
  0x12   :  { %p70_p8 = por %p69_p7, %p68_p6 }
  0x14   :  { %p71_p9 = pnand %p70_p8, %p64_p5 }
  0x80   :  { %v23_v1 = vpop.permute.xlu0 %22 }
  0x81   :  { %24 = vst [vmem:[#allocation5] sm:$0xff] %v23_v1 }
  0x82   :  { %74 = shalt.err (!%p71_p9)
}
  0x83   :  { %34 = dma.vmem_to_hbm [thread:$0]  %s32_s13, 128, %s107_s1, [#allocation4]  }
  0x84   :  { %85 = dma.done.wait [#allocation4], 128  }
  0x85   :  { %86 = vsyncadd [#allocation4], 4294967168 }
  0x86   :  { %38 = vsyncpa [#allocation3], 1 }
  0x87   :  { %39 = vsyncpa [#allocation4], 1 }

</bundles_post_ra>
